<compile_context>
chip_gen: v5e
topology: v5e:2x2
jax: 0.10.0
libtpu: 0.0.40
codegen_flags: <defaults>
</compile_context>

<pallas_src>
import jax
import jax.numpy as jnp
from jax.experimental import pallas as pl
from jax.experimental.pallas import tpu as pltpu


def _spectral_sampling_kernel(fund_ref, assign_ref, lms_ref, out_ref):
    """One (spatial tile, batch element) grid step.

    fund_ref:   SMEM (C*C,) f32     cone fundamentals, row-major (scalar prefetch)
    assign_ref: VMEM (R, 128) i32   per-pixel cone-type index for this spatial tile
    lms_ref:    VMEM (1, C, R, 128) lms tile for one batch element (native dtype)
    out_ref:    VMEM (1, R, 128)    sampled retinal tile
    """
    C = lms_ref.shape[1]
    assign = assign_ref[...]                        # (R, 128) int32
    lms = lms_ref[0].astype(jnp.float32)            # (C, R, 128), f32 accumulate

    # out[p] = sum_c fund[assign[p], c] * lms[c, p]
    # Static unroll over the tiny cone-type axis: per-type projection via VPU
    # FMAs, then merge with one select per cone type.
    acc = jnp.zeros(assign.shape, jnp.float32)
    for o in range(C):
        proj = lms[0] * fund_ref[o * C + 0]
        for c in range(1, C):
            proj = proj + lms[c] * fund_ref[o * C + c]
        acc = jnp.where(assign == o, proj, acc)
    out_ref[0] = acc.astype(out_ref.dtype)


def _choose_tiling(hw, max_rows):
    """Return (rows per spatial tile R, total rows incl. padding)."""
    rows_min = pl.cdiv(hw, 128)
    if rows_min <= max_rows:
        return rows_min, rows_min          # single tile; full-dim block always legal
    r_cap = max_rows - (max_rows % 8)
    # Prefer an exact divisor (no row padding); must be a multiple of 8 (sublane).
    for cand in range(r_cap, 7, -8):
        if rows_min % cand == 0:
            return cand, rows_min
    rows = pl.cdiv(rows_min, r_cap) * r_cap
    return r_cap, rows


def spectral_sampling_forward(lms_nchw, cone_fundamentals, cone_assignment,
                              *, max_tile_rows=1024):
    """lms_nchw: (N, C, H, W); cone_fundamentals: (C, C); cone_assignment: (H, W) int."""
    N, C, H, W = lms_nchw.shape
    HW = H * W
    R, total_rows = _choose_tiling(HW, max_tile_rows)
    HW_pad = total_rows * 128
    num_tiles = total_rows // R

    # Flatten spatial dims to lane/sublane-dense slabs; pad only if needed.
    lms_flat = lms_nchw.reshape(N, C, HW)
    assign_flat = cone_assignment.reshape(HW).astype(jnp.int32)
    if HW_pad != HW:
        pad = HW_pad - HW
        lms_flat = jnp.pad(lms_flat, ((0, 0), (0, 0), (0, pad)))
        assign_flat = jnp.pad(assign_flat, ((0, pad),))

    lms_t = lms_flat.reshape(N, C, total_rows, 128)
    assign_t = assign_flat.reshape(total_rows, 128)
    fund_flat = cone_fundamentals.astype(jnp.float32).reshape(C * C)

    out_dtype = lms_nchw.dtype
    bytes_accessed = (lms_t.size * lms_t.dtype.itemsize
                      + assign_t.size * 4
                      + N * HW_pad * jnp.dtype(out_dtype).itemsize
                      + C * C * 4)
    cost = pl.CostEstimate(flops=2 * N * C * C * HW_pad, transcendentals=0,
                           bytes_accessed=bytes_accessed)

    out = pl.pallas_call(
        _spectral_sampling_kernel,
        out_shape=jax.ShapeDtypeStruct((N, total_rows, 128), out_dtype),
        grid_spec=pltpu.PrefetchScalarGridSpec(
            num_scalar_prefetch=1,               # cone fundamentals -> SMEM
            grid=(num_tiles, N),                 # N innermost: assign tile stays resident
            in_specs=[
                pl.BlockSpec((R, 128), lambda t, n, fund: (t, 0)),              # cone index
                pl.BlockSpec((1, C, R, 128), lambda t, n, fund: (n, 0, t, 0)),  # lms
            ],
            out_specs=pl.BlockSpec((1, R, 128), lambda t, n, fund: (n, t, 0)),
        ),
        compiler_params=pltpu.CompilerParams(
            dimension_semantics=("parallel", "parallel"),  # both v7x TCs get work
            vmem_limit_bytes=32 * 1024 * 1024,
        ),
        cost_estimate=cost,
    )(fund_flat, assign_t, lms_t)

    out_flat = out.reshape(N, HW_pad)
    if HW_pad != HW:
        out_flat = out_flat[:, :HW]
    return out_flat.reshape(N, 1, H, W)


class SpectralSampling:
    """Concrete stand-in for AbstractSpectralSampling (deterministic params)."""

    def __init__(self, channels, height, width):
        self.C, self.H, self.W = channels, height, width

        # Deterministic cone fundamentals: row-normalized LMS-like mixing matrix.
        base = jnp.eye(channels, dtype=jnp.float32) * 0.8 + 0.1
        self.cone_fundamentals = base / jnp.sum(base, axis=1, keepdims=True)

        # Deterministic cone mosaic as a per-pixel cone-type index: (i + j) % C.
        ii = jnp.arange(height)[:, None]
        jj = jnp.arange(width)[None, :]
        self.cone_assignment = ((ii + jj) % channels).astype(jnp.int32)  # (H, W)

    def forward(self, lms):
        return spectral_sampling_forward(
            lms, self.cone_fundamentals, self.cone_assignment)

    def get_cone_fundamentals(self):
        return self.cone_fundamentals

    def get_cone_mosaic(self):
        # Dense one-hot (C, H, W) view of the mosaic (API compatibility).
        mosaic = jax.nn.one_hot(self.cone_assignment, self.C, dtype=jnp.float32)
        return jnp.transpose(mosaic, (2, 0, 1))


if __name__ == "__main__":
    def _reference(model, lms):
        proj = jnp.einsum("oc,nchw->nohw", model.get_cone_fundamentals(), lms)
        return jnp.sum(proj * model.get_cone_mosaic()[None], axis=1, keepdims=True)

    # Lane-aligned case (H*W multiple of 128).
    N, C, H, W = 2, 3, 16, 16
    lms = jax.random.uniform(jax.random.PRNGKey(0), (N, C, H, W), dtype=jnp.float32)
    model = SpectralSampling(C, H, W)
    out = jax.block_until_ready(model.forward(lms))
    assert out.shape == (N, 1, H, W)
    assert jnp.allclose(out, _reference(model, lms), atol=1e-5, rtol=1e-5)

    # Non-lane-aligned case (exercises the wrapper-side padding path).
    H2, W2 = 10, 16
    lms2 = jax.random.uniform(jax.random.PRNGKey(1), (N, C, H2, W2), dtype=jnp.float32)
    model2 = SpectralSampling(C, H2, W2)
    out2 = jax.block_until_ready(model2.forward(lms2))
    assert out2.shape == (N, 1, H2, W2)
    assert jnp.allclose(out2, _reference(model2, lms2), atol=1e-5, rtol=1e-5)

    print("KERNEL_OK")
</pallas_src>

<mosaic_0001>
module attributes {stable_mosaic.version = 11 : i64} {
  func.func @_spectral_sampling_kernel(%arg0: i32, %arg1: i32, %arg2: memref<9xf32, #tpu.memory_space<smem>>, %arg3: memref<2x128xi32, #tpu.memory_space<vmem>>, %arg4: memref<1x3x2x128xf32, #tpu.memory_space<vmem>>, %arg5: memref<1x2x128xf32, #tpu.memory_space<vmem>>) attributes {dimension_semantics = [#tpu.dimension_semantics<parallel>, #tpu.dimension_semantics<parallel>], iteration_bounds = array<i64: 1, 2>, scalar_prefetch = 1 : i64, scratch_operands = 0 : i64, tpu.core_type = #tpu.core_type<tc>, window_params = [{transform_indices = @transform_0, window_bounds = array<i64: 2, 128>}, {transform_indices = @transform_1, window_bounds = array<i64: 1, 3, 2, 128>}, {transform_indices = @transform_2, window_bounds = array<i64: 1, 2, 128>}]} {
    %c0 = arith.constant 0 : index
    %c0_0 = arith.constant 0 : index
    %0 = vector.load %arg3[%c0, %c0_0] : memref<2x128xi32, #tpu.memory_space<vmem>>, vector<2x128xi32>
    %c0_1 = arith.constant 0 : index
    %c0_2 = arith.constant 0 : index
    %c0_3 = arith.constant 0 : index
    %c0_4 = arith.constant 0 : index
    %1 = vector.load %arg4[%c0_1, %c0_2, %c0_3, %c0_4] : memref<1x3x2x128xf32, #tpu.memory_space<vmem>>, vector<1x3x2x128xf32>
    %2 = vector.shape_cast %1 : vector<1x3x2x128xf32> to vector<3x2x128xf32>
    %cst = arith.constant 0.000000e+00 : f32
    %3 = vector.broadcast %cst : f32 to vector<2x128xf32>
    %4 = vector.extract_strided_slice %2 {offsets = [0, 0, 0], sizes = [1, 2, 128], strides = [1, 1, 1]} : vector<3x2x128xf32> to vector<1x2x128xf32>
    %5 = vector.shape_cast %4 : vector<1x2x128xf32> to vector<2x128xf32>
    %c0_5 = arith.constant 0 : index
    %6 = memref.load %arg2[%c0_5] : memref<9xf32, #tpu.memory_space<smem>>
    %7 = vector.broadcast %6 : f32 to vector<2x128xf32>
    %8 = arith.mulf %5, %7 : vector<2x128xf32>
    %9 = vector.extract_strided_slice %2 {offsets = [1, 0, 0], sizes = [1, 2, 128], strides = [1, 1, 1]} : vector<3x2x128xf32> to vector<1x2x128xf32>
    %10 = vector.shape_cast %9 : vector<1x2x128xf32> to vector<2x128xf32>
    %c1 = arith.constant 1 : index
    %11 = memref.load %arg2[%c1] : memref<9xf32, #tpu.memory_space<smem>>
    %12 = vector.broadcast %11 : f32 to vector<2x128xf32>
    %13 = arith.mulf %10, %12 : vector<2x128xf32>
    %14 = arith.addf %8, %13 : vector<2x128xf32>
    %15 = vector.extract_strided_slice %2 {offsets = [2, 0, 0], sizes = [1, 2, 128], strides = [1, 1, 1]} : vector<3x2x128xf32> to vector<1x2x128xf32>
    %16 = vector.shape_cast %15 : vector<1x2x128xf32> to vector<2x128xf32>
    %c2 = arith.constant 2 : index
    %17 = memref.load %arg2[%c2] : memref<9xf32, #tpu.memory_space<smem>>
    %18 = vector.broadcast %17 : f32 to vector<2x128xf32>
    %19 = arith.mulf %16, %18 : vector<2x128xf32>
    %20 = arith.addf %14, %19 : vector<2x128xf32>
    %c0_i32 = arith.constant 0 : i32
    %21 = vector.broadcast %c0_i32 : i32 to vector<2x128xi32>
    %22 = arith.cmpi eq, %0, %21 : vector<2x128xi32>
    %23 = arith.select %22, %20, %3 : vector<2x128xi1>, vector<2x128xf32>
    %24 = vector.extract_strided_slice %2 {offsets = [0, 0, 0], sizes = [1, 2, 128], strides = [1, 1, 1]} : vector<3x2x128xf32> to vector<1x2x128xf32>
    %25 = vector.shape_cast %24 : vector<1x2x128xf32> to vector<2x128xf32>
    %c3 = arith.constant 3 : index
    %26 = memref.load %arg2[%c3] : memref<9xf32, #tpu.memory_space<smem>>
    %27 = vector.broadcast %26 : f32 to vector<2x128xf32>
    %28 = arith.mulf %25, %27 : vector<2x128xf32>
    %29 = vector.extract_strided_slice %2 {offsets = [1, 0, 0], sizes = [1, 2, 128], strides = [1, 1, 1]} : vector<3x2x128xf32> to vector<1x2x128xf32>
    %30 = vector.shape_cast %29 : vector<1x2x128xf32> to vector<2x128xf32>
    %c4 = arith.constant 4 : index
    %31 = memref.load %arg2[%c4] : memref<9xf32, #tpu.memory_space<smem>>
    %32 = vector.broadcast %31 : f32 to vector<2x128xf32>
    %33 = arith.mulf %30, %32 : vector<2x128xf32>
    %34 = arith.addf %28, %33 : vector<2x128xf32>
    %35 = vector.extract_strided_slice %2 {offsets = [2, 0, 0], sizes = [1, 2, 128], strides = [1, 1, 1]} : vector<3x2x128xf32> to vector<1x2x128xf32>
    %36 = vector.shape_cast %35 : vector<1x2x128xf32> to vector<2x128xf32>
    %c5 = arith.constant 5 : index
    %37 = memref.load %arg2[%c5] : memref<9xf32, #tpu.memory_space<smem>>
    %38 = vector.broadcast %37 : f32 to vector<2x128xf32>
    %39 = arith.mulf %36, %38 : vector<2x128xf32>
    %40 = arith.addf %34, %39 : vector<2x128xf32>
    %c1_i32 = arith.constant 1 : i32
    %41 = vector.broadcast %c1_i32 : i32 to vector<2x128xi32>
    %42 = arith.cmpi eq, %0, %41 : vector<2x128xi32>
    %43 = arith.select %42, %40, %23 : vector<2x128xi1>, vector<2x128xf32>
    %44 = vector.extract_strided_slice %2 {offsets = [0, 0, 0], sizes = [1, 2, 128], strides = [1, 1, 1]} : vector<3x2x128xf32> to vector<1x2x128xf32>
    %45 = vector.shape_cast %44 : vector<1x2x128xf32> to vector<2x128xf32>
    %c6 = arith.constant 6 : index
    %46 = memref.load %arg2[%c6] : memref<9xf32, #tpu.memory_space<smem>>
    %47 = vector.broadcast %46 : f32 to vector<2x128xf32>
    %48 = arith.mulf %45, %47 : vector<2x128xf32>
    %49 = vector.extract_strided_slice %2 {offsets = [1, 0, 0], sizes = [1, 2, 128], strides = [1, 1, 1]} : vector<3x2x128xf32> to vector<1x2x128xf32>
    %50 = vector.shape_cast %49 : vector<1x2x128xf32> to vector<2x128xf32>
    %c7 = arith.constant 7 : index
    %51 = memref.load %arg2[%c7] : memref<9xf32, #tpu.memory_space<smem>>
    %52 = vector.broadcast %51 : f32 to vector<2x128xf32>
    %53 = arith.mulf %50, %52 : vector<2x128xf32>
    %54 = arith.addf %48, %53 : vector<2x128xf32>
    %55 = vector.extract_strided_slice %2 {offsets = [2, 0, 0], sizes = [1, 2, 128], strides = [1, 1, 1]} : vector<3x2x128xf32> to vector<1x2x128xf32>
    %56 = vector.shape_cast %55 : vector<1x2x128xf32> to vector<2x128xf32>
    %c8 = arith.constant 8 : index
    %57 = memref.load %arg2[%c8] : memref<9xf32, #tpu.memory_space<smem>>
    %58 = vector.broadcast %57 : f32 to vector<2x128xf32>
    %59 = arith.mulf %56, %58 : vector<2x128xf32>
    %60 = arith.addf %54, %59 : vector<2x128xf32>
    %c2_i32 = arith.constant 2 : i32
    %61 = vector.broadcast %c2_i32 : i32 to vector<2x128xi32>
    %62 = arith.cmpi eq, %0, %61 : vector<2x128xi32>
    %63 = arith.select %62, %60, %43 : vector<2x128xi1>, vector<2x128xf32>
    %c0_6 = arith.constant 0 : index
    %c0_7 = arith.constant 0 : index
    %c0_8 = arith.constant 0 : index
    %64 = vector.load %arg5[%c0_6, %c0_7, %c0_8] : memref<1x2x128xf32, #tpu.memory_space<vmem>>, vector<1x2x128xf32>
    %65 = vector.shape_cast %64 : vector<1x2x128xf32> to vector<2x128xf32>
    %66 = vector.shape_cast %63 : vector<2x128xf32> to vector<1x2x128xf32>
    tpu.vector_store %arg5[%c0_6, %c0_7, %c0_8], %66 {strides = array<i32>} : memref<1x2x128xf32, #tpu.memory_space<vmem>>, vector<1x2x128xf32>,
    return
  }
  func.func @transform_0(%arg0: i32, %arg1: i32, %arg2: memref<9xf32, #tpu.memory_space<smem>>) -> (i32, i32) {
    %c0_i32 = arith.constant 0 : i32
    %c0_i32_0 = arith.constant 0 : i32
    return %arg0, %c0_i32 : i32, i32
  }
  func.func @transform_1(%arg0: i32, %arg1: i32, %arg2: memref<9xf32, #tpu.memory_space<smem>>) -> (i32, i32, i32, i32) {
    %c0_i32 = arith.constant 0 : i32
    %c0_i32_0 = arith.constant 0 : i32
    %c0_i32_1 = arith.constant 0 : i32
    return %arg1, %c0_i32, %arg0, %c0_i32_0 : i32, i32, i32, i32
  }
  func.func @transform_2(%arg0: i32, %arg1: i32, %arg2: memref<9xf32, #tpu.memory_space<smem>>) -> (i32, i32, i32) {
    %c0_i32 = arith.constant 0 : i32
    %c0_i32_0 = arith.constant 0 : i32
    return %arg1, %arg0, %c0_i32 : i32, i32, i32
  }
}

</mosaic_0001>

<bundles_post_ra>
// kernel: tpu_custom_call.1
= control target key start
LH: loop header
LB: loop body
LE: loop exit
PB: predicated region body
PF: predicated region fallthrough
CT: control target
= control target key end

     0   :  { %s630_s15 = smov [#allocation3]   ;;  %s809_s0 = inlined_call_operand.hbm [shape: f32[9], index: 0, kind: input, shape index: {}]   ;;  %s810_s1 = inlined_call_operand.hbm [shape: s32[2,128], index: 1, kind: input, shape index: {}]   ;;  %s811_s2 = inlined_call_operand.hbm [shape: f32[2,3,2,128], index: 2, kind: input, shape index: {}]   ;;  %s812_s3 = inlined_call_operand.hbm [shape: f32[2,2,128], index: 3, kind: output, shape index: {}]  }
   0x1   :  { %s9_s14 = sshll.u32 %s809_s0, 4  ;;  %s10_s14 = int_to_ptr.hbm [resolvable:$true] %s9_s14 }
   0x2   :  { %12 = dma.hbm_to_smem %s10_s14, 16, %s630_s15, [#allocation2] }
   0x3   :  { %592 = dma.done.wait [#allocation2], 16 }
   0x4   :  { %593 = vsyncadd [#allocation2], 4294967280 }
   0x5   :  { %15 = sfence }
   0x6   :  { %16 = vsyncpa [#allocation5], 0 }
   0x7   :  { %17 = vsyncpa [#allocation8], 0 }
   0x8   :  { %19 = vsyncpa [#allocation8 + $0x1], 0 }
   0x9   :  { %20 = vsyncpa [#allocation6], 0 }
   0xa   :  { %22 = vsyncpa [#allocation6 + $0x1], 0  ;;  %s657_s16 = smov 0   ;;  %s659_s17 = smov 0  }
   0xb   :  { %s661_s18 = smov 0   ;;  %s663_s19 = smov 0  }
   0xc   :  { %s665_s0 = smov 0   ;;  %s667_s20 = smov 0  }
   0xd LB: > { %s368_s21 = sadd.s32 4294967295, %s628_s20   ;;  %s369_s22 = sadd.s32 4294967294, %s628_s20   ;;  %s628_s20 = sphi %s667_s20, %s28_s20   ;;  %s624_s0 = sphi %s665_s0, %s824_s0   ;;  %s620_s19 = sphi %s663_s19, %s823_s19   ;;  %s616_s18 = sphi %s661_s18, %s822_s18   ;;  %s612_s17 = sphi %s659_s17, %s821_s17   ;;  %s608_s16 = sphi %s657_s16, %s820_s16  }
   0xe   : > { %s75_s23 = sadd.s32 1, %s616_s18  ;;  %p82_p0 = scmp.ne.s32.totalorder %s616_s18, %s612_s17 }
   0xf   : > { %p83_p1 = scmp.eq.s32.totalorder %s628_s20, 0  ;;  %p88_p2 = scmp.ne.s32.totalorder %s612_s17, %s608_s16 }
  0x10   : > { %p695_p3 = scmp.eq.s32.totalorder %s368_s21, 0  ;;  %p114_p4 = scmp.eq.s32.totalorder %s368_s21, 1 }
  0x11   : > { %p699_p5 = por %p83_p1, %p82_p0  ;;  %p120_p6 = scmp.eq.s32.totalorder %s369_s22, 1 }
  0x12   : > { %p705_p7 = por %p695_p3, %p88_p2  ;;  %p709_p8 = por %p114_p4, %p82_p0 }
  0x13   : > { %p713_p9 = por %p120_p6, %p88_p2  ;;  %p370_p10 = scmp.ge.s32.totalorder %s628_s20, 1 }
  0x14   : > { %p127_p11 = scmp.lt.s32.totalorder %s628_s20, 3  ;;  %s141_s4 = sshll.u32 %s810_s1, 4  ;;  %s142_s4 = int_to_ptr.hbm [resolvable:$true] %s141_s4 }
  0x15   : > { %s631_s6 = smov [#allocation4]   ;;  %p372_p13 = scmp.ge.s32.totalorder %s628_s20, 2 }
  0x16   : > { %p722_p12 = pnand %p370_p10, %p127_p11  ;;  %s143_s7 = sshll.u32 %s631_s6, 4  ;;  %s144_s7 = int_to_ptr.vmem [resolvable:$true] %s143_s7 }
  0x17   : > { %p413_p1 = scmp.lt.s32.totalorder %s628_s20, 2  ;;  %s37_s9 = sadd.s32 1, %s624_s0 }
  0x18   : > { %p400_p0 = pneg %p722_p12  ;;  %p38_p6 = scmp.ge.s32.totalorder %s37_s9, 2 }
  0x19   : > { %p734_p4 = pnand %p413_p1, %p699_p5  ;;  %s154_s10 = sand.u32 1, %s616_s18  }
  0x1a   : > { %p401_p2 = pnand %p400_p0, %p695_p3  ;;  %s826_s9 = smov (%p38_p6, %s37_s9), 0 }
  0x1b   : > { %s389_s11 = smul.u32 6, %s154_s10  ;;  %s70_s12 = ssub.s32 %s624_s0, %s826_s9 }
  0x1c   : > { %403 = dma.hbm_to_vmem [thread:$0]  (!%p401_p2), %s142_s4, 32, %s144_s7, [#allocation5]  }
  0x1d   : > { %s390_s13 = smul.u32 6, %s624_s0  ;;  %p73_p10 = scmp.eq.s32.totalorder %s70_s12, 0 }
  0x1e   : > { %s158_s22 = scalar_lea.vmem [#allocation7], %s389_s11  ;;  %s155_s4 = scalar_lea.sflag [#allocation8], %s154_s10 }
  0x1f   : > { %s164_s21 = scalar_lea.hbm %s811_s2, %s390_s13  ;;  %s167_s25 = sshll.u32 %s158_s22, 4  ;;  %s168_s25 = int_to_ptr.vmem [resolvable:$true] %s167_s25 }
  0x20   : > { %s751_s29 = scalar_select %p73_p10, %s616_s18, %s75_s23  }
  0x21   : > { %s165_s30 = sshll.u32 %s164_s21, 4  ;;  %s632_s6 = smov 32   ;;  %s166_s30 = int_to_ptr.hbm [resolvable:$true] %s165_s30 }
  0x22   : > { %s633_s7 = smov 2   ;;  %179 = sbr.rel (%p722_p12) target bundleno = 69 (0x45), region = 28 }
  0x23   : > { %407 = dma.hbm_to_vmem [thread:$0]  (!%p734_p4), %s166_s30, 96, %s168_s25, %s155_s4, %s632_s6, %s632_s6, %s633_s7  }
  0x27   : > { %595 = dma.done.wait (%p695_p3), [#allocation5], 32  }
  0x28   : > { %597 = vsyncadd (%p695_p3), [#allocation5], 4294967264  ;;  %s762_s23 = sand.u32 1, %s612_s17  }
  0x29   : > { %s391_s10 = smul.u32 6, %s762_s23  ;;  %s187_s11 = scalar_lea.sflag [#allocation8], %s762_s23 }
  0x2b   : > { %s190_s12 = scalar_lea.vmem [#allocation7], %s391_s10 }
  0x2c   : > { %599 = dma.done.wait (%p705_p7), %s187_s11, 96  }
  0x2d   : > { %601 = vsyncadd (%p705_p7), %s187_s11, 4294967200  ;;  %s216_s5 = sld [smem:[#allocation3]]  ;;  %v213_v0 = vld [vmem:[%s190_s12] sm:$0x3]  ;;  %v214_v1 = vld [vmem:[%s190_s12 + $0x2] sm:$0x3] }
  0x2e   : > { %s377_s8 = sld [smem:[#allocation3 + $0x1]]  ;;  %v215_v3 = vld [vmem:[%s190_s12 + $0x4] sm:$0x3]  ;;  %v212_v8 = vld [vmem:[#allocation4] sm:$0x3]  ;;  %s376_s25 = sshll.u32 %s762_s23, 1 }
  0x2f   : > { %s378_s13 = sld [smem:[#allocation3 + $0x2]]  ;;  %s386_s30 = sshll.u32 %s620_s19, 1  ;;  %vm227_vm0 = vcmp.eq.s32.totalorder %v212_v8, 0  ;;  %vm240_vm1 = vcmp.eq.s32.totalorder %v212_v8, 1  ;;  %vm253_vm2 = vcmp.eq.s32.totalorder %v212_v8, 2 }
  0x30   : > { %s379_s14 = sld [smem:[#allocation3 + $0x3]]  ;;  %s268_s7 = scalar_lea.hbm %s812_s3, %s386_s30 }
  0x31   : > { %s380_s24 = sld [smem:[#allocation3 + $0x4]]  ;;  %s211_s19 = scalar_lea.vmem [#allocation9], %s376_s25 }
  0x32   : > { %s381_s15 = sld [smem:[#allocation3 + $0x5]]  ;;  %s270_s10 = sshll.u32 %s211_s19, 4  ;;  %s271_s10 = int_to_ptr.vmem [resolvable:$true] %s270_s10 }
  0x33   : > { %v217_v2 = vstv %s216_s5  ;;  %s382_s21 = sld [smem:[#allocation3 + $0x6]]  ;;  %s272_s11 = sshll.u32 %s268_s7, 4  ;;  %s273_s11 = int_to_ptr.hbm [resolvable:$true] %s272_s11 }
  0x34   : > { %v218_v4 = vmul.f32 %v217_v2, %v213_v0  ;;  %v220_v5 = vstv %s377_s8  ;;  %s383_s22 = sld [smem:[#allocation3 + $0x7]]  ;;  %s257_s12 = scalar_lea.sflag [#allocation6], %s762_s23 }
  0x35   : > { %v221_v6 = vmul.f32 %v220_v5, %v214_v1  ;;  %v224_v7 = vstv %s378_s13  ;;  %s384_s26 = sld [smem:[#allocation3 + $0x8]]  ;;  %s554_s5 = sshra.s32 %s273_s11, 4  ;;  %s555_s5 = int_to_ptr.hbm [resolvable:$true] %s554_s5 }
  0x36   : > { %v225_v9 = vmul.f32 %v224_v7, %v215_v3  ;;  %v230_v10 = vstv %s379_s14  ;;  %s556_s8 = scalar_lea.hbm %s555_s5, 2  ;;  %p561_p11 = scmp.lt.s32.totalorder %s555_s5, %s812_s3 }
  0x37   : > { %v222_v11 = vadd.f32 %v221_v6, %v218_v4  ;;  %v231_v12 = vmul.f32 %v230_v10, %v213_v0  ;;  %v233_v13 = vstv %s380_s24  ;;  %p557_p3 = scmp.ne.s32.totalorder %s555_s5, %s556_s8  ;;  %s560_s24 = scalar_lea.hbm %s812_s3, 4 }
  0x38   : > { %v234_v14 = vmul.f32 %v233_v13, %v214_v1  ;;  %v237_v15 = vstv %s381_s15  ;;  %p562_p12 = scmp.lt.s32.totalorder %s560_s24, %s556_s8 }
  0x39   : > { %v226_v16 = vadd.f32 %v225_v9, %v222_v11  ;;  %v238_v17 = vmul.f32 %v237_v15, %v215_v3  ;;  %v243_v19 = vstv %s382_s21  ;;  %p558_p5 = pnand %p557_p3, %p709_p8 }
  0x3a   : > { %v235_v18 = vadd.f32 %v234_v14, %v231_v12  ;;  %v244_v20 = vmul.f32 %v243_v19, %v213_v0  ;;  %v246_v21 = vstv %s383_s22  ;;  %p563_p0 = por %p562_p12, %p561_p11 }
  0x3b   : > { %v228_v22 = vsel %vm227_vm0, %v226_v16, 0.0  ;;  %v247_v24 = vmul.f32 %v246_v21, %v214_v1  ;;  %v250_v25 = vstv %s384_s26  ;;  %p559_p7 = pneg %p558_p5 }
  0x3c   : > { %v239_v23 = vadd.f32 %v238_v17, %v235_v18  ;;  %v251_v26 = vmul.f32 %v250_v25, %v215_v3 }
  0x3d   : > { %v248_v27 = vadd.f32 %v247_v24, %v244_v20  ;;  %p564_p1 = pnand %p563_p0, %p559_p7 }
  0x3e   : > { %v241_v28 = vsel %vm240_vm1, %v239_v23, %v228_v22 }
  0x3f   : > { %v252_v29 = vadd.f32 %v251_v26, %v248_v27 }
  0x41   : > { %v254_v30 = vsel %vm253_vm2, %v252_v29, %v241_v28 }
  0x42   : > { %255 = vst [vmem:[%s211_s19] sm:$0x3] %v254_v30 }
  0x43   : > { %567 = shalt.err (!%p564_p1)
}
  0x44   : > { %398 = dma.vmem_to_hbm [thread:$0]  (%p709_p8), %s271_s10, 32, %s273_s11, %s257_s12  }
  0x45 PF: > { %s284_s23 = sand.u32 1, %s608_s16   ;;  %p409_p2 = pnand %p372_p13, %p713_p9 }
  0x46   : > { %s285_s22 = scalar_lea.sflag [#allocation6], %s284_s23 }
  0x47   : > { %p410_p4 = pneg %p409_p2 }
  0x49   : > { %603 = dma.done.wait (%p410_p4), %s285_s22, 32  }
  0x4a   : > { %605 = vsyncadd (%p410_p4), %s285_s22, 4294967264  ;;  %s28_s20 = sadd.s32 1, %s628_s20   ;;  %s820_s16 = smov %s612_s17 }
  0x4b   : > { %p25_p6 = scmp.ge.s32.totalorder %s28_s20, 4   ;;  %s821_s17 = smov %s616_s18 }
  0x4c   : > { %s822_s18 = smov %s751_s29  ;;  %s823_s19 = smov %s624_s0 }
  0x4d   : > { %s824_s0 = smov %s826_s9  ;;  %27 = sbr.rel (!%p25_p6) target bundleno = 13 (0xd), region = 79 }
  0x52   :  { %291 = vsyncpa [#allocation5], 1 }
  0x53   :  { %293 = vsyncpa [#allocation5 + $0x1], 1 }
  0x54   :  { %294 = vsyncpa [#allocation8], 1 }
  0x55   :  { %296 = vsyncpa [#allocation8 + $0x1], 1 }
  0x56   :  { %297 = vsyncpa [#allocation6], 1 }
  0x57   :  { %299 = vsyncpa [#allocation6 + $0x1], 1 }

</bundles_post_ra>
